<compile_context>
chip_gen: v5e
topology: v5e:2x2
jax: 0.10.0
libtpu: 0.0.40
codegen_flags: <defaults>
</compile_context>

<pallas_src>
import functools

import jax
import jax.numpy as jnp
from jax.experimental import pallas as pl
from jax.experimental.pallas import tpu as pltpu

HIDDEN = 10          # hidden width of Net1
NUM_SAMPLES = 5
LANES = 128          # TPU lane width
XSUB = 8             # sublane-aligned height of the x / output tiles
PSUB = 16            # hidden dim padded up to a multiple of 8 sublanes


def _net1_kernel(noise_std, x_ref, params_ref, noise_ref, o_ref):
    """One noisy forward pass per grid step (grid axis = samples).

    params_ref : (PSUB, LANES) packed tile; lane-column 0 = w1, 1 = b1, 2 = w2,
                 element [0, 3] = b2.  Hidden dim lives on sublanes; rows >= HIDDEN pad.
    x_ref      : (XSUB, LANES); row 0 holds x[:, 0] lane-dense (batch on lanes).
    noise_ref  : (1, PSUB, LANES) per-sample N(0,1) noise in the same packed layout.
    o_ref      : (1, XSUB, LANES); y is written lane-dense (batch on lanes).
    """
    p = params_ref[...]                                     # (PSUB, LANES)
    if noise_std != 0.0:                                    # static (closure) branch
        p = p + noise_ref[0] * noise_std                    # perturb packed params

    w1 = p[:, 0:1]                                          # (PSUB, 1)
    b1 = p[:, 1:2]                                          # (PSUB, 1)
    w2 = p[:, 2:3]                                          # (PSUB, 1)
    b2 = p[0:1, 3:4]                                        # (1, 1)

    x = x_ref[0:1, :]                                       # (1, LANES), batch on lanes

    # Linear(1 -> 10) + tanh: hidden on sublanes, batch on lanes.
    h = jnp.tanh(x * w1 + b1)                               # (PSUB, LANES)

    # Mask padded hidden rows (noise added to pad rows must not leak into the sum).
    row = jax.lax.broadcasted_iota(jnp.int32, (PSUB, LANES), 0)
    contrib = jnp.where(row < HIDDEN, h * w2, 0.0)          # (PSUB, LANES)

    # Linear(10 -> 1): reduce over the hidden (sublane) axis -> lane-dense result.
    y = jnp.sum(contrib, axis=0, keepdims=True) + b2        # (1, LANES)

    o_ref[...] = jnp.broadcast_to(y, o_ref.shape).astype(o_ref.dtype)


@functools.partial(jax.jit, static_argnames=("num_samples", "noise_std"))
def net1_sample_outputs(x, params, key, num_samples=NUM_SAMPLES, noise_std=0.1):
    """num_samples noisy forwards (== Net1.sample_outputs), fused in one pallas_call.

    Returns (num_samples, B, 1).
    """
    w1, b1, w2, b2 = params            # torch shapes: (10,1), (10,), (1,10), (1,)
    B = x.shape[0]
    assert x.shape == (B, 1) and B <= LANES

    # Pack x lane-dense and all parameters into single aligned tiles.
    x_packed = jnp.zeros((XSUB, LANES), jnp.float32).at[0, :B].set(x[:, 0])
    params_packed = (
        jnp.zeros((PSUB, LANES), jnp.float32)
        .at[:HIDDEN, 0].set(w1[:, 0])
        .at[:HIDDEN, 1].set(b1)
        .at[:HIDDEN, 2].set(w2[0, :])
        .at[0, 3].set(b2[0])
    )

    # Per-sample N(0,1) noise in the packed layout.  cumsum reproduces the PyTorch
    # module's in-place `weight.data +=` (the "restore" is a no-op, so noise
    # accumulates across successive forward() calls inside sample_outputs).
    if noise_std != 0.0:
        noise = jax.random.normal(key, (num_samples, PSUB, LANES), jnp.float32)
        noise = jnp.cumsum(noise, axis=0)
    else:
        noise = jnp.zeros((num_samples, PSUB, LANES), jnp.float32)

    out = pl.pallas_call(
        functools.partial(_net1_kernel, float(noise_std)),
        out_shape=jax.ShapeDtypeStruct((num_samples, XSUB, LANES), jnp.float32),
        grid=(num_samples,),
        in_specs=[
            pl.BlockSpec((XSUB, LANES), lambda s: (0, 0)),       # x: VMEM-resident
            pl.BlockSpec((PSUB, LANES), lambda s: (0, 0)),       # params: VMEM-resident
            pl.BlockSpec((1, PSUB, LANES), lambda s: (s, 0, 0)),  # per-sample noise
        ],
        out_specs=pl.BlockSpec((1, XSUB, LANES), lambda s: (s, 0, 0)),
        compiler_params=pltpu.CompilerParams(
            dimension_semantics=("parallel",)),  # sample axis shards across v7x's 2 TCs
    )(x_packed, params_packed, noise)

    return out[:, 0, :B].reshape(num_samples, B, 1)


def net1_forward(x, params, key, noise_std=0.1):
    """One stochastic forward pass (== Net1.forward): fresh noise on the params."""
    return net1_sample_outputs(x, params, key, num_samples=1, noise_std=noise_std)[0]


def _reference_noiseless(x, params):
    """Pure-JAX Net1 forward with zero noise (element-wise math, no matmul rounding)."""
    w1, b1, w2, b2 = params
    h = jnp.tanh(x * w1[:, 0][None, :] + b1[None, :])      # (B, HIDDEN)
    return jnp.sum(h * w2[0][None, :], axis=-1, keepdims=True) + b2   # (B, 1)


def init_params(key):
    """Deterministic PyTorch-style (uniform 1/sqrt(fan_in)) init for the two Linears."""
    k1, k2, k3, k4 = jax.random.split(key, 4)
    bound1 = 1.0                      # Linear(1, 10): fan_in = 1
    bound2 = 1.0 / (HIDDEN ** 0.5)    # Linear(10, 1): fan_in = 10
    w1 = jax.random.uniform(k1, (HIDDEN, 1), jnp.float32, -bound1, bound1)
    b1 = jax.random.uniform(k2, (HIDDEN,), jnp.float32, -bound1, bound1)
    w2 = jax.random.uniform(k3, (1, HIDDEN), jnp.float32, -bound2, bound2)
    b2 = jax.random.uniform(k4, (1,), jnp.float32, -bound2, bound2)
    return (w1, b1, w2, b2)


if __name__ == "__main__":
    root = jax.random.PRNGKey(0)
    k_param, k_x, k_noise = jax.random.split(root, 3)

    params = init_params(k_param)
    x = jax.random.normal(k_x, (8, 1), jnp.float32)   # batch=8, in_features=1

    # Deterministic check: with noise_std=0 the kernel must match the pure-JAX MLP.
    y0 = jax.block_until_ready(net1_forward(x, params, k_noise, noise_std=0.0))
    ref0 = _reference_noiseless(x, params)
    assert y0.shape == (8, 1)
    assert jnp.allclose(y0, ref0, atol=1e-4, rtol=1e-4), "mismatch vs reference"

    # Stochastic path: 5 noisy forwards in ONE pallas_call.
    samples = jax.block_until_ready(
        net1_sample_outputs(x, params, k_noise, num_samples=NUM_SAMPLES, noise_std=0.1))
    assert samples.shape == (NUM_SAMPLES, 8, 1)
    assert bool(jnp.all(jnp.isfinite(samples)))
    assert float(jnp.max(jnp.std(samples, axis=0))) > 0.0, "noise was not applied"

    # Single noisy forward pass.
    y = jax.block_until_ready(net1_forward(x, params, k_noise, noise_std=0.1))
    assert y.shape == (8, 1) and bool(jnp.all(jnp.isfinite(y)))

    print("KERNEL_OK")
</pallas_src>

<mosaic_0001>
module attributes {stable_mosaic.version = 11 : i64} {
  func.func @_net1_kernel(%arg0: i32, %arg1: memref<8x128xf32, #tpu.memory_space<vmem>>, %arg2: memref<16x128xf32, #tpu.memory_space<vmem>>, %arg3: memref<1x16x128xf32, #tpu.memory_space<vmem>>, %arg4: memref<1x8x128xf32, #tpu.memory_space<vmem>>) attributes {dimension_semantics = [#tpu.dimension_semantics<parallel>], iteration_bounds = array<i64: 1>, scalar_prefetch = 0 : i64, scratch_operands = 0 : i64, tpu.core_type = #tpu.core_type<tc>, window_params = [{pipeline_mode = #tpu.pipeline_mode<synchronous>, transform_indices = @transform_0, window_bounds = array<i64: 8, 128>}, {pipeline_mode = #tpu.pipeline_mode<synchronous>, transform_indices = @transform_1, window_bounds = array<i64: 16, 128>}, {transform_indices = @transform_2, window_bounds = array<i64: 1, 16, 128>}, {transform_indices = @transform_3, window_bounds = array<i64: 1, 8, 128>}]} {
    %c0 = arith.constant 0 : index
    %c0_0 = arith.constant 0 : index
    %0 = vector.load %arg2[%c0, %c0_0] : memref<16x128xf32, #tpu.memory_space<vmem>>, vector<16x128xf32>
    %1 = vector.extract_strided_slice %0 {offsets = [0, 0], sizes = [16, 1], strides = [1, 1]} : vector<16x128xf32> to vector<16x1xf32>
    %2 = vector.extract_strided_slice %0 {offsets = [0, 1], sizes = [16, 1], strides = [1, 1]} : vector<16x128xf32> to vector<16x1xf32>
    %3 = vector.extract_strided_slice %0 {offsets = [0, 2], sizes = [16, 1], strides = [1, 1]} : vector<16x128xf32> to vector<16x1xf32>
    %4 = vector.extract_strided_slice %0 {offsets = [0, 3], sizes = [1, 1], strides = [1, 1]} : vector<16x128xf32> to vector<1x1xf32>
    %c0_1 = arith.constant 0 : index
    %c0_2 = arith.constant 0 : index
    %5 = vector.load %arg1[%c0_1, %c0_2] : memref<8x128xf32, #tpu.memory_space<vmem>>, vector<1x128xf32>
    %6 = vector.broadcast %5 : vector<1x128xf32> to vector<16x128xf32>
    %7 = vector.broadcast %1 : vector<16x1xf32> to vector<16x128xf32>
    %8 = arith.mulf %6, %7 : vector<16x128xf32>
    %9 = vector.broadcast %2 : vector<16x1xf32> to vector<16x128xf32>
    %10 = arith.addf %8, %9 : vector<16x128xf32>
    %11 = math.tanh %10 : vector<16x128xf32>
    %12 = tpu.iota {dimensions = array<i32: 0>} : vector<16x128xi32>
    %c10_i32 = arith.constant 10 : i32
    %13 = vector.broadcast %c10_i32 : i32 to vector<16x128xi32>
    %14 = arith.cmpi slt, %12, %13 : vector<16x128xi32>
    %15 = vector.broadcast %3 : vector<16x1xf32> to vector<16x128xf32>
    %16 = arith.mulf %11, %15 : vector<16x128xf32>
    %cst = arith.constant 0.000000e+00 : f32
    %17 = vector.broadcast %cst : f32 to vector<16x128xf32>
    %18 = arith.select %14, %16, %17 : vector<16x128xi1>, vector<16x128xf32>
    %cst_3 = arith.constant dense<0.000000e+00> : vector<128xf32>
    %19 = vector.multi_reduction <add>, %18, %cst_3 [0] : vector<16x128xf32> to vector<128xf32>
    %20 = vector.shape_cast %19 : vector<128xf32> to vector<1x128xf32>
    %21 = vector.broadcast %4 : vector<1x1xf32> to vector<1x128xf32>
    %22 = arith.addf %20, %21 : vector<1x128xf32>
    %23 = vector.shape_cast %22 : vector<1x128xf32> to vector<1x1x128xf32>
    %24 = vector.broadcast %23 : vector<1x1x128xf32> to vector<1x8x128xf32>
    %c0_4 = arith.constant 0 : index
    %c0_5 = arith.constant 0 : index
    %c0_6 = arith.constant 0 : index
    %25 = vector.load %arg4[%c0_4, %c0_5, %c0_6] : memref<1x8x128xf32, #tpu.memory_space<vmem>>, vector<1x8x128xf32>
    tpu.vector_store %arg4[%c0_4, %c0_5, %c0_6], %24 {strides = array<i32>} : memref<1x8x128xf32, #tpu.memory_space<vmem>>, vector<1x8x128xf32>,
    return
  }
  func.func @transform_0(%arg0: i32) -> (i32, i32) {
    %c0_i32 = arith.constant 0 : i32
    %c0_i32_0 = arith.constant 0 : i32
    %c0_i32_1 = arith.constant 0 : i32
    return %c0_i32, %c0_i32_0 : i32, i32
  }
  func.func @transform_1(%arg0: i32) -> (i32, i32) {
    %c0_i32 = arith.constant 0 : i32
    %c0_i32_0 = arith.constant 0 : i32
    %c0_i32_1 = arith.constant 0 : i32
    return %c0_i32, %c0_i32_0 : i32, i32
  }
  func.func @transform_2(%arg0: i32) -> (i32, i32, i32) {
    %c0_i32 = arith.constant 0 : i32
    %c0_i32_0 = arith.constant 0 : i32
    %c0_i32_1 = arith.constant 0 : i32
    return %arg0, %c0_i32, %c0_i32_0 : i32, i32, i32
  }
  func.func @transform_3(%arg0: i32) -> (i32, i32, i32) {
    %c0_i32 = arith.constant 0 : i32
    %c0_i32_0 = arith.constant 0 : i32
    %c0_i32_1 = arith.constant 0 : i32
    return %arg0, %c0_i32, %c0_i32_0 : i32, i32, i32
  }
}

</mosaic_0001>

<bundles_post_ra>
// kernel: net1_sample_outputs.1
= control target key start
LH: loop header
LB: loop body
LE: loop exit
PB: predicated region body
PF: predicated region fallthrough
CT: control target
= control target key end

     0   :  { %v90_v0 = vmov 1   ;;  %v91_v1 = vmov 0   ;;  %v92_v3 = vmov 2   ;;  %v93_v5 = vmov 3   ;;  %s126_s1 = inlined_call_operand.vmem [shape: f32[16,128], index: 1, kind: input, shape index: {}]   ;;  %s127_s0 = inlined_call_operand.vmem [shape: f32[8,128], index: 0, kind: input, shape index: {}]   ;;  %s128_s2 = inlined_call_operand.vmem [shape: f32[1,16,128], index: 2, kind: input, shape index: {}]   ;;  %s129_s3 = inlined_call_operand.vmem [shape: f32[1,8,128], index: 3, kind: output, shape index: {}]  }
   0x1   :  { %82 = vset.pattern.permute.xlu1 %v90_v0  ;;  %81 = vset.pattern.permute.xlu0 %v91_v1  ;;  %v15_v2 = vld [vmem:[%s126_s1 + $0x8] sm:$0xff]  ;;  %v14_v4 = vld [vmem:[%s126_s1] sm:$0xff]  ;;  %v42_v11 = vlaneseq }
   0x2   :  { %35 = vperm.xlu1 %82, %v15_v2   ;;  %25 = vperm.xlu0 %81, %v15_v2   ;;  %v85_v6 = vld [vmem:[%s127_s0] ss:$0 sm:$0xff] }
   0x3   :  { %83 = vset.pattern.permute.xlu2 %v92_v3  ;;  %v43_v15 = vshrl.u32 %v42_v11, 7 }
   0x4   :  { %52 = vperm.xlu2 %83, %v15_v2  }
   0x5   :  { %v44_v19 = vadd.s32 8, %v43_v15 }
   0x7   :  { %vm46_vm0 = vcmp.lt.s32.totalorder %v44_v19, 10 }
   0xa   :  { %31 = vperm.xlu1 %82, %v14_v4   ;;  %20 = vperm.xlu0 %81, %v14_v4  }
   0xc   :  { %48 = vperm.xlu2 %83, %v14_v4  }
  0x12   :  { %84 = vset.pattern.permute.xlu0 %v93_v5 }
  0x13   :  { %67 = vperm.xlu0 %84, %v14_v4  }
  0x5e   :  { %v53_v13 = vpop.permute.xlu2 %52 }
  0x66   :  { %v49_v22 = vpop.permute.xlu2 %48 }
  0x74   :  { %v36_v7 = vpop.permute.xlu1 %35  ;;  %v26_v8 = vpop.permute.xlu0 %25 }
  0x75   :  { %v29_v9 = vmul.f32 %v85_v6, %v26_v8 }
  0x77   :  { %v39_v10 = vadd.f32 %v36_v7, %v29_v9 }
  0x79   :  { %86 = vtanh.f32 %v39_v10 }
  0x7c   :  { %v21_v12 = vpop.permute.xlu0 %20  ;;  %v32_v16 = vpop.permute.xlu1 %31 }
  0x7d   :  { %v28_v14 = vmul.f32 %v85_v6, %v21_v12 }
  0x7f   :  { %v38_v17 = vadd.f32 %v32_v16, %v28_v14  ;;  %v87_v18 = vpop.eup %86 }
  0x80   :  { %v56_v20 = vmul.f32 %v87_v18, %v53_v13 }
  0x81   :  { %88 = vtanh.f32 %v38_v17 }
  0x82   :  { %v58_v24 = vsel %vm46_vm0, %v56_v20, 0.0 }
  0x85   :  { %v68_v31 = vpop.permute.xlu0 %67 }
  0x87   :  { %v89_v21 = vpop.eup %88 }
  0x88   :  { %v55_v23 = vmul.f32 %v89_v21, %v49_v22 }
  0x8a   :  { %v59_v25 = vadd.f32 %v58_v24, %v55_v23 }
  0x8c   :  { %v60_v26 = vrot.slane %v59_v25, 4 }
  0x8e   :  { %v61_v27 = vadd.f32 %v60_v26, %v59_v25 }
  0x90   :  { %v62_v28 = vrot.slane %v61_v27, 2 }
  0x92   :  { %v63_v29 = vadd.f32 %v62_v28, %v61_v27 }
  0x94   :  { %v64_v30 = vrot.slane %v63_v29, 1 }
  0x96   :  { %v65_v32 = vadd.f32 %v64_v30, %v63_v29 }
  0x98   :  { %v70_v33 = vadd.f32 %v68_v31, %v65_v32 }
  0x9a   :  { %v71_v34 = vperm.slane %v70_v33, 0 }
  0x9c   :  { %72 = vst [vmem:[%s129_s3] sm:$0xff] %v71_v34 }

</bundles_post_ra>
